<compile_context>
chip_gen: v7x
topology: tpu7x:2x2x1
jax: 0.10.0
libtpu: 0.0.40
codegen_flags: <defaults>
</compile_context>

<pallas_src>
import functools

import jax
import jax.numpy as jnp
from jax.experimental import pallas as pl
from jax.experimental.pallas import tpu as pltpu

LANE = 128


def _round_up(x, m):
    return ((x + m - 1) // m) * m


# ----------------------------------------------------------------------------
# Fused whole-MLP kernel (small / medium widths: everything lives in VMEM once)
# ----------------------------------------------------------------------------
def _fused_mlp_kernel(x_ref, *refs, relu_flags):
    # refs = (w0, b0, w1, b1, ..., w_{L-1}, b_{L-1}, out_ref)
    o_ref = refs[-1]
    h = x_ref[...]                      # f32 activations
    for i, relu in enumerate(relu_flags):
        w = refs[2 * i][...]            # [Din, Dout], pre-transposed, bf16
        b = refs[2 * i + 1][...]        # [1, Dout], f32
        acc = jnp.dot(h.astype(w.dtype), w, preferred_element_type=jnp.float32)
        acc = acc + b
        if relu:
            acc = jnp.maximum(acc, 0.0)
        h = acc                         # keep f32 between layers; cast at next dot
    o_ref[...] = h.astype(o_ref.dtype)


def fused_mlp_pallas(x, weights, biases, relu_flags):
    B = x.shape[0]
    d_out = weights[-1].shape[1]
    flops = int(sum(2 * B * w.shape[0] * w.shape[1] for w in weights))
    bytes_accessed = int(
        x.size * x.dtype.itemsize
        + sum(w.size * w.dtype.itemsize for w in weights)
        + sum(b.size * b.dtype.itemsize for b in biases)
        + B * d_out * 4
    )
    vmem = pl.BlockSpec(memory_space=pltpu.MemorySpace.VMEM)
    operands = [x]
    for w, b in zip(weights, biases):
        operands += [w, b]
    return pl.pallas_call(
        functools.partial(_fused_mlp_kernel, relu_flags=tuple(relu_flags)),
        out_shape=jax.ShapeDtypeStruct((B, d_out), jnp.float32),
        in_specs=[vmem] * len(operands),
        out_specs=vmem,
        cost_estimate=pl.CostEstimate(
            flops=flops, transcendentals=0, bytes_accessed=bytes_accessed
        ),
    )(*operands)


# ----------------------------------------------------------------------------
# Tiled per-layer linear kernel (fallback for wide layers)
# ----------------------------------------------------------------------------
def _tiled_linear_kernel(x_ref, w_ref, b_ref, o_ref, acc_ref, *, apply_relu):
    @pl.when(pl.program_id(2) == 0)
    def _init():
        acc_ref[...] = jnp.zeros_like(acc_ref)

    acc_ref[...] += jnp.dot(x_ref[...], w_ref[...],
                            preferred_element_type=jnp.float32)

    @pl.when(pl.program_id(2) == pl.num_programs(2) - 1)
    def _finalize():
        res = acc_ref[...] + b_ref[...]          # bias added once, not per K step
        if apply_relu:
            res = jnp.maximum(res, 0.0)
        o_ref[...] = res.astype(o_ref.dtype)


def linear_pallas_tiled(x, w_t, b2d, *, apply_relu, tm=128, tn=128, tk=256):
    """x: [M, K] (compute dtype), w_t: [K, N] pre-transposed, b2d: [1, N] f32."""
    M, K = x.shape
    K2, N = w_t.shape
    assert K == K2
    tm, tn, tk = min(tm, M), min(tn, N), min(tk, K)
    assert M % tm == 0 and N % tn == 0 and K % tk == 0, "pad dims to tile multiples"
    grid = (M // tm, N // tn, K // tk)
    flops = int(2 * M * N * K)
    bytes_accessed = int(x.size * x.dtype.itemsize + w_t.size * w_t.dtype.itemsize
                         + b2d.size * 4 + M * N * 4)
    return pl.pallas_call(
        functools.partial(_tiled_linear_kernel, apply_relu=apply_relu),
        out_shape=jax.ShapeDtypeStruct((M, N), jnp.float32),
        grid=grid,
        in_specs=[
            pl.BlockSpec((tm, tk), lambda i, j, k: (i, k)),
            pl.BlockSpec((tk, tn), lambda i, j, k: (k, j)),
            pl.BlockSpec((1, tn), lambda i, j, k: (0, j)),
        ],
        out_specs=pl.BlockSpec((tm, tn), lambda i, j, k: (i, j)),
        scratch_shapes=[pltpu.VMEM((tm, tn), jnp.float32)],
        compiler_params=pltpu.CompilerParams(
            dimension_semantics=("parallel", "parallel", "arbitrary"),
            vmem_limit_bytes=32 * 1024 * 1024,
        ),
        cost_estimate=pl.CostEstimate(
            flops=flops, transcendentals=0, bytes_accessed=bytes_accessed
        ),
    )(x, w_t, b2d)


# ----------------------------------------------------------------------------
# Parameters / model
# ----------------------------------------------------------------------------
def init_linear_params(key, in_features, out_features):
    """torch.nn.Linear-style init, but weights generated directly in [in, out]
    (i.e. pre-transposed relative to torch's [out, in])."""
    kw, kb = jax.random.split(key)
    bound = 1.0 / (in_features ** 0.5)
    w = jax.random.uniform(kw, (in_features, out_features), jnp.float32, -bound, bound)
    b = jax.random.uniform(kb, (out_features,), jnp.float32, -bound, bound)
    return w, b


class BlockFCLPallas:
    """JAX/Pallas re-implementation of BlockFCL's forward pass (inference mode)."""

    def __init__(self, total_dim, number_of_classes, config, fcsize, key,
                 param_dtype=jnp.bfloat16, vmem_budget_bytes=12 * 1024 * 1024):
        self.total_dim = total_dim
        self.number_of_classes = number_of_classes
        self.param_dtype = param_dtype
        # Lane-dense final output: pad the classifier width up to a multiple of 128.
        self.num_classes_padded = max(LANE, _round_up(number_of_classes, LANE))

        fc_widths = list(config["model_parameters"][fcsize]["fc"])
        widths = fc_widths + [self.num_classes_padded]
        relu_flags = [True] * len(fc_widths) + [False]

        keys = jax.random.split(key, len(widths))
        weights, biases = [], []
        prev = total_dim
        for i, (width, k) in enumerate(zip(widths, keys)):
            is_last = i == len(widths) - 1
            real_out = number_of_classes if is_last else width
            w, b = init_linear_params(k, prev, real_out)
            if is_last and real_out < width:
                # zero-pad classifier columns so padded outputs are exactly 0
                w = jnp.pad(w, ((0, 0), (0, width - real_out)))
                b = jnp.pad(b, ((0, width - real_out),))
            weights.append(w.astype(param_dtype))            # [Din, Dout] bf16
            biases.append(b.reshape(1, -1).astype(jnp.float32))  # [1, Dout] f32
            prev = width

        self.weights = tuple(weights)
        self.biases = tuple(biases)
        self.relu_flags = tuple(relu_flags)

        # Choose fused (single kernel, all params VMEM-resident) vs. per-layer
        # tiled matmuls for wide layers.
        param_bytes = (sum(w.size * w.dtype.itemsize for w in self.weights)
                       + sum(b.size * b.dtype.itemsize for b in self.biases))
        self.use_fused = param_bytes <= vmem_budget_bytes

        if self.use_fused:
            def _forward(x):
                out = fused_mlp_pallas(x, self.weights, self.biases, self.relu_flags)
                return out[:, : self.number_of_classes]
        else:
            def _forward(x):
                h = x.astype(self.param_dtype)
                n = len(self.weights)
                for i, (w, b, relu) in enumerate(
                        zip(self.weights, self.biases, self.relu_flags)):
                    h = linear_pallas_tiled(h, w, b, apply_relu=relu)
                    if i < n - 1:
                        h = h.astype(self.param_dtype)
                return h[:, : self.number_of_classes]

        self._forward = jax.jit(_forward)

    def __call__(self, x):
        return self._forward(x)


def reference_forward(model, x):
    """Pure-JAX reference matching the kernel precision (bf16 matmul, f32 acc)."""
    h = x
    for w, b, relu in zip(model.weights, model.biases, model.relu_flags):
        h = jnp.dot(h.astype(w.dtype), w, preferred_element_type=jnp.float32) + b
        if relu:
            h = jnp.maximum(h, 0.0)
    return h[:, : model.number_of_classes]


if __name__ == "__main__":
    key = jax.random.PRNGKey(0)
    k_in1, k_p1, k_in2, k_p2 = jax.random.split(key, 4)

    # ---- Case 1: module-consistent toy shapes -> single fused-MLP kernel ----
    batch = 8
    total_dim = 32
    number_of_classes = 4
    config = {"model_parameters": {"small": {"fc": [64, 32]}}}
    x = jax.random.normal(k_in1, (batch, total_dim), jnp.float32)

    model = BlockFCLPallas(total_dim, number_of_classes, config, "small", k_p1)
    assert model.use_fused
    out = jax.block_until_ready(model(x))
    ref = reference_forward(model, x)
    assert out.shape == (batch, number_of_classes)
    assert jnp.allclose(out, ref, atol=1e-2, rtol=1e-2), "fused Pallas mismatch vs reference"

    # ---- Case 2: wider layers -> per-layer tiled matmul fallback ----
    batch2 = 16
    total_dim2 = 256
    config2 = {"model_parameters": {"big": {"fc": [256, 128]}}}
    x2 = jax.random.normal(k_in2, (batch2, total_dim2), jnp.float32)

    model2 = BlockFCLPallas(total_dim2, number_of_classes, config2, "big", k_p2,
                            vmem_budget_bytes=0)  # force the tiled path
    assert not model2.use_fused
    out2 = jax.block_until_ready(model2(x2))
    ref2 = reference_forward(model2, x2)
    assert out2.shape == (batch2, number_of_classes)
    assert jnp.allclose(out2, ref2, atol=1e-2, rtol=1e-2), "tiled Pallas mismatch vs reference"

    print("KERNEL_OK")
</pallas_src>

<mosaic_0001>
module attributes {stable_mosaic.version = 11 : i64} {
  func.func @_fused_mlp_kernel(%arg0: memref<8x32xf32, #tpu.memory_space<vmem>>, %arg1: memref<32x64xbf16, #tpu.memory_space<vmem>>, %arg2: memref<1x64xf32, #tpu.memory_space<vmem>>, %arg3: memref<64x32xbf16, #tpu.memory_space<vmem>>, %arg4: memref<1x32xf32, #tpu.memory_space<vmem>>, %arg5: memref<32x128xbf16, #tpu.memory_space<vmem>>, %arg6: memref<1x128xf32, #tpu.memory_space<vmem>>, %arg7: memref<8x128xf32, #tpu.memory_space<vmem>>) attributes {dimension_semantics = [], scalar_prefetch = 0 : i64, scratch_operands = 0 : i64, tpu.core_type = #tpu.core_type<tc>} {
    %c0 = arith.constant 0 : index
    %c0_0 = arith.constant 0 : index
    %0 = vector.load %arg0[%c0, %c0_0] : memref<8x32xf32, #tpu.memory_space<vmem>>, vector<8x32xf32>
    %c0_1 = arith.constant 0 : index
    %c0_2 = arith.constant 0 : index
    %1 = vector.load %arg1[%c0_1, %c0_2] : memref<32x64xbf16, #tpu.memory_space<vmem>>, vector<32x64xbf16>
    %c0_3 = arith.constant 0 : index
    %c0_4 = arith.constant 0 : index
    %2 = vector.load %arg2[%c0_3, %c0_4] : memref<1x64xf32, #tpu.memory_space<vmem>>, vector<1x64xf32>
    %3 = arith.truncf %0 : vector<8x32xf32> to vector<8x32xbf16>
    %cst = arith.constant dense<0.000000e+00> : vector<8x64xf32>
    %4 = tpu.matmul %3, %1, %cst {dimension_numbers = #tpu.dot_dimension_numbers<[1], [0], [0], [1], [0, 0, 1, 1], [], []>} : vector<8x32xbf16>, vector<32x64xbf16>, vector<8x64xf32> -> vector<8x64xf32>
    %5 = vector.broadcast %2 : vector<1x64xf32> to vector<8x64xf32>
    %6 = arith.addf %4, %5 : vector<8x64xf32>
    %cst_5 = arith.constant 0.000000e+00 : f32
    %7 = vector.broadcast %cst_5 : f32 to vector<8x64xf32>
    %8 = arith.maximumf %6, %7 : vector<8x64xf32>
    %c0_6 = arith.constant 0 : index
    %c0_7 = arith.constant 0 : index
    %9 = vector.load %arg3[%c0_6, %c0_7] : memref<64x32xbf16, #tpu.memory_space<vmem>>, vector<64x32xbf16>
    %c0_8 = arith.constant 0 : index
    %c0_9 = arith.constant 0 : index
    %10 = vector.load %arg4[%c0_8, %c0_9] : memref<1x32xf32, #tpu.memory_space<vmem>>, vector<1x32xf32>
    %11 = arith.truncf %8 : vector<8x64xf32> to vector<8x64xbf16>
    %cst_10 = arith.constant dense<0.000000e+00> : vector<8x32xf32>
    %12 = tpu.matmul %11, %9, %cst_10 {dimension_numbers = #tpu.dot_dimension_numbers<[1], [0], [0], [1], [0, 0, 1, 1], [], []>} : vector<8x64xbf16>, vector<64x32xbf16>, vector<8x32xf32> -> vector<8x32xf32>
    %13 = vector.broadcast %10 : vector<1x32xf32> to vector<8x32xf32>
    %14 = arith.addf %12, %13 : vector<8x32xf32>
    %cst_11 = arith.constant 0.000000e+00 : f32
    %15 = vector.broadcast %cst_11 : f32 to vector<8x32xf32>
    %16 = arith.maximumf %14, %15 : vector<8x32xf32>
    %c0_12 = arith.constant 0 : index
    %c0_13 = arith.constant 0 : index
    %17 = vector.load %arg5[%c0_12, %c0_13] : memref<32x128xbf16, #tpu.memory_space<vmem>>, vector<32x128xbf16>
    %c0_14 = arith.constant 0 : index
    %c0_15 = arith.constant 0 : index
    %18 = vector.load %arg6[%c0_14, %c0_15] : memref<1x128xf32, #tpu.memory_space<vmem>>, vector<1x128xf32>
    %19 = arith.truncf %16 : vector<8x32xf32> to vector<8x32xbf16>
    %cst_16 = arith.constant dense<0.000000e+00> : vector<8x128xf32>
    %20 = tpu.matmul %19, %17, %cst_16 {dimension_numbers = #tpu.dot_dimension_numbers<[1], [0], [0], [1], [0, 0, 1, 1], [], []>} : vector<8x32xbf16>, vector<32x128xbf16>, vector<8x128xf32> -> vector<8x128xf32>
    %21 = vector.broadcast %18 : vector<1x128xf32> to vector<8x128xf32>
    %22 = arith.addf %20, %21 : vector<8x128xf32>
    %c0_17 = arith.constant 0 : index
    %c0_18 = arith.constant 0 : index
    %23 = vector.load %arg7[%c0_17, %c0_18] : memref<8x128xf32, #tpu.memory_space<vmem>>, vector<8x128xf32>
    tpu.vector_store %arg7[%c0_17, %c0_18], %22 {strides = array<i32>} : memref<8x128xf32, #tpu.memory_space<vmem>>, vector<8x128xf32>,
    return
  }
}

</mosaic_0001>

<bundles_post_ra>
// kernel: _forward.1
= control target key start
LH: loop header
LB: loop body
LE: loop exit
PB: predicated region body
PF: predicated region fallthrough
CT: control target
= control target key end

     0   :  { %12 = vsyncpa [#allocation3], 0  ;;  %s495_s0 = inlined_call_operand.vmem [shape: f32[8,32], index: 0, kind: input, shape index: {}]   ;;  %s496_s1 = inlined_call_operand.hbm [shape: bf16[32,64], index: 1, kind: input, shape index: {}]   ;;  %s497_s2 = inlined_call_operand.vmem [shape: f32[1,64], index: 2, kind: input, shape index: {}]   ;;  %s498_s3 = inlined_call_operand.hbm [shape: bf16[64,32], index: 3, kind: input, shape index: {}]   ;;  %s499_s4 = inlined_call_operand.vmem [shape: f32[1,32], index: 4, kind: input, shape index: {}]   ;;  %s500_s5 = inlined_call_operand.vmem [shape: bf16[32,128], index: 5, kind: input, shape index: {}]   ;;  %s501_s6 = inlined_call_operand.vmem [shape: f32[1,128], index: 6, kind: input, shape index: {}]   ;;  %s502_s7 = inlined_call_operand.vmem [shape: f32[8,128], index: 7, kind: output, shape index: {}]  }
   0x1   :  { %13 = vsyncpa [#allocation5], 0  ;;  %s399_s24 = smov [#allocation2]   ;;  %s351_s28 = scalar_lea.hbm %s496_s1, 256 }
   0x2   :  { %s21_s25 = sshll.u32 %s399_s24, 4  ;;  %p352_p0 = scmp.ne.s32.totalorder %s496_s1, %s351_s28  ;;  %s22_s25 = int_to_ptr.vmem [resolvable:$true] %s21_s25 }
   0x3   :  { %p355_p1 = scmp.lt.u32.totalorder %s351_s28, %s496_s1 }
   0x5   :  { %p357_p2 = pnand %p355_p1, %p352_p0 }
   0x7   :  { %360 = shalt.err (!%p357_p2)
}
   0x8   :  { %s361_s10 = scalar_lea.vmem %s22_s25, 256  ;;  %p366_p4 = scmp.lt.s32.totalorder %s22_s25, %s22_s25 }
   0x9   :  { %p362_p3 = scmp.ne.s32.totalorder %s22_s25, %s361_s10  ;;  %p367_p5 = scmp.lt.s32.totalorder %s361_s10, %s361_s10 }
   0xb   :  { %p368_p6 = por %p367_p5, %p366_p4 }
   0xd   :  { %p369_p7 = pnand %p368_p6, %p362_p3 }
   0xf   :  { %372 = shalt.err (!%p369_p7)
}
  0x10   :  { %s400_s11 = smov 64   ;;  %s401_s12 = smov 4  }
  0x11   :  { %27 = dma.hbm_to_vmem [thread:$0]  %s496_s1, 256, %s22_s25, [#allocation3], %s400_s11, %s400_s11, %s401_s12  }
  0x12   :  { %s402_s15 = smov [#allocation4]   ;;  %s373_s19 = scalar_lea.hbm %s498_s3, 512 }
  0x13   :  { %s35_s16 = sshll.u32 %s402_s15, 4  ;;  %p374_p8 = scmp.ne.s32.totalorder %s498_s3, %s373_s19  ;;  %s36_s16 = int_to_ptr.vmem [resolvable:$true] %s35_s16 }
  0x14   :  { %p377_p9 = scmp.lt.u32.totalorder %s373_s19, %s498_s3 }
  0x16   :  { %p379_p10 = pnand %p377_p9, %p374_p8 }
  0x18   :  { %382 = shalt.err (!%p379_p10)
}
  0x19   :  { %s383_s24 = scalar_lea.vmem %s36_s16, 512  ;;  %p388_p12 = scmp.lt.s32.totalorder %s36_s16, %s36_s16 }
  0x1a   :  { %p384_p11 = scmp.ne.s32.totalorder %s36_s16, %s383_s24  ;;  %p389_p13 = scmp.lt.s32.totalorder %s383_s24, %s383_s24 }
  0x1c   :  { %p390_p0 = por %p389_p13, %p388_p12 }
  0x1e   :  { %p391_p1 = pnand %p390_p0, %p384_p11 }
  0x20   :  { %394 = shalt.err (!%p391_p1)
}
  0x21   :  { %41 = dma.hbm_to_vmem [thread:$0]  %s498_s3, 512, %s36_s16, [#allocation5], %s400_s11, %s400_s11, %s401_s12  }
  0x22   :  { %395 = dma.done.wait [#allocation3], 256  }
  0x23   :  { %396 = vsyncadd [#allocation3], 4294967040 }
  0x24   :  { %397 = dma.done.wait [#allocation5], 512  }
  0x25   :  { %398 = vsyncadd [#allocation5], 4294966784  ;;  %v403_v0 = vmov 0.0   ;;  %vm404_vm0 = vmmov 0   ;;  %v343_v1 = vld [vmem:[#allocation2] sm:$0xff]   ;;  %v344_v2 = vld [vmem:[#allocation2 + $0x8] sm:$0xff]  }
  0x26   :  { %309 = vmatprep.subr.bf16.mxu0 %v403_v0  ;;  %313 = vmatprep.mubr.msk.bf16.mxu0 %vm404_vm0, %v403_v0  ;;  %v55_v3 = vld [vmem:[%s495_s0] sm:$0xff]  ;;  %v345_v4 = vld [vmem:[#allocation4] sm:$0xff]   ;;  %vm80_vm1 = vcmask 261120   ;;  %v346_v5 = vld [vmem:[#allocation4 + $0x8] sm:$0xff]   ;;  %vm165_vm2 = vcmask 523264  }
  0x27   :  { %317 = vmatprep.subr.bf16.mxu1 %v403_v0  ;;  %325 = vmatprep.mubr.msk.bf16.mxu1 %vm404_vm0, %v403_v0  ;;  %v61_v6 = vpack.c.bf16 %v55_v3, %v55_v3  ;;  %v347_v7 = vld [vmem:[#allocation4 + $0x10] sm:$0xff]   ;;  %v348_v8 = vld [vmem:[#allocation4 + $0x18] sm:$0xff]  }
  0x28   :  { %310 = vmatpush3.bf16.msra.mxu0 %v343_v1  ;;  %318 = vmatpush3.bf16.msra.mxu1 %v345_v4  ;;  %v349_v9 = vld [vmem:[%s500_s5] sm:$0xff]   ;;  %v350_v18 = vld [vmem:[%s500_s5 + $0x8] sm:$0xff]  }
  0x29   :  { %311 = vmatprep.subr.bf16.mxu0 %v403_v0  ;;  %319 = vmatprep.subr.bf16.mxu1 %v403_v0  ;;  %v284_v10 = vld [vmem:[%s497_s2] ss:$0 sm:$0xff] }
  0x2a   :  { %v288_v19 = vld [vmem:[%s499_s4] ss:$0 sm:$0xff] }
  0x2b   :  { %v294_v27 = vld [vmem:[%s501_s6] ss:$0 sm:$0xff] }
  0x2c   :  { %312 = vmatpush3.bf16.msra.mxu0 %v344_v2  ;;  %320 = vmatpush3.bf16.msra.mxu1 %v346_v5 }
  0x2d   :  { %329 = vmatprep.subr.bf16.mxu0 %v403_v0  ;;  %321 = vmatprep.subr.bf16.mxu1 %v403_v0 }
  0x2f   :  { %314 = vmatmul.mubr.msk.bf16.vlgmr.msra.gmra.mrb[0].mxu0 %vm80_vm1, %v61_v6 }
  0x30   :  { %333 = vmatprep.mubr.msk.bf16.mxu0 %vm404_vm0, %v403_v0  ;;  %322 = vmatpush3.bf16.msra.mxu1 %v347_v7 }
  0x31   :  { %323 = vmatprep.subr.bf16.mxu1 %v403_v0  ;;  %330 = vmatpush3.bf16.msra.mxu0 %v349_v9 }
  0x32   :  { %331 = vmatprep.subr.bf16.mxu0 %v403_v0 }
  0x34   :  { %324 = vmatpush3.bf16.msra.mxu1 %v348_v8 }
  0x35   :  { %332 = vmatpush3.bf16.msra.mxu0 %v350_v18 }
 0x102   :  { %v118_v11 = vpop.f32.mrb[0].mxu0 }
 0x103   :  { %v119_v12 = vadd.f32 %v284_v10, %v118_v11  ;;  %v315_v13 = vpop.f32.mrb[1].mxu0 }
 0x104   :  { %v121_v14 = vpop.f32.mrb[2].mxu0 }
 0x105   :  { %v124_v15 = vmax.f32 %v119_v12, 0.0  ;;  %v316_v16 = vpop.f32.mrb[3].mxu0 }
 0x107   :  { %v134_v17 = vpack.c.bf16 %v124_v15, %v124_v15 }
 0x109   :  { %326 = vmatmul.mubr.msk.bf16.vlgmr.msra.gmra.mrb[0].mxu1 %vm165_vm2, %v134_v17 }
 0x1dc   :  { %v203_v20 = vpop.f32.mrb[0].mxu1 }
 0x1dd   :  { %v204_v21 = vadd.f32 %v288_v19, %v203_v20  ;;  %v327_v22 = vpop.f32.mrb[1].mxu1 }
 0x1de   :  { %v206_v23 = vpop.f32.mrb[2].mxu1 }
 0x1df   :  { %v209_v24 = vmax.f32 %v204_v21, 0.0  ;;  %v328_v25 = vpop.f32.mrb[3].mxu1 }
 0x1e1   :  { %v215_v26 = vpack.c.bf16 %v209_v24, %v209_v24 }
 0x1e3   :  { %334 = vmatmul.mubr.msk.bf16.vlgmr.msra.gmra.mrb[4].mxu0 %vm80_vm1, %v215_v26 }
 0x2b6   :  { %v271_v28 = vpop.f32.mrb[4].mxu0 }
 0x2b7   :  { %v272_v29 = vadd.f32 %v294_v27, %v271_v28  ;;  %v335_v30 = vpop.f32.mrb[5].mxu0 }
 0x2b8   :  { %v274_v31 = vpop.f32.mrb[6].mxu0 }
 0x2b9   :  { %277 = vst [vmem:[%s502_s7] sm:$0xff] %v272_v29  ;;  %v336_v32 = vpop.f32.mrb[7].mxu0 }
 0x2ba   :  { %282 = vsyncpa [#allocation3], 1 }
 0x2bb   :  { %283 = vsyncpa [#allocation5], 1 }

</bundles_post_ra>
